<compile_context>
chip_gen: v6e
topology: v6e:2x2x1
jax: 0.10.0
libtpu: 0.0.40
codegen_flags: <defaults>
</compile_context>

<pallas_src>
import jax
import jax.numpy as jnp
from jax import lax
from jax.experimental import pallas as pl
from jax.experimental.pallas import tpu as pltpu


def _cdiv(a, b):
    return -(-a // b)


def _round_up(a, b):
    return _cdiv(a, b) * b


def _pad8(c):
    return _round_up(c, 8)


def _vmem_budget():
    """(per-step in/out block budget, scoped vmem limit) in bytes, generation-aware."""
    try:
        phys = int(pltpu.get_tpu_info().vmem_capacity_bytes)
    except Exception:   # query unavailable -> assume the tightest (v7x: 64 MiB per TC)
        phys = 64 << 20
    budget = min(phys // 2, 48 << 20)          # 32 MiB on v7x, 48 MiB on v5e/v6e
    vmem_limit = min(phys * 3 // 4, 96 << 20)  # headroom for weights + sub-chunk temps
    return budget, vmem_limit


def _pick_tiling(hw, n_batch, per_px_bytes, budget_bytes):
    """Pick (tile_hw, num_tiles, hw_pad) with tile_hw * num_tiles == hw_pad >= hw.

    Prefers a lane-aligned (multiple-of-128) tile that divides H*W exactly (no padding
    or output-slice HBM passes), fits the per-step VMEM budget, and gives the parallel
    grid >= ~8 total steps so both v7x TensorCores stay fed.
    """
    cap = max(128, (budget_bytes // per_px_bytes) // 128 * 128)
    min_tiles = max(1, _cdiv(8, n_batch))             # aim for >= 8 total grid steps...
    min_tiles = min(min_tiles, max(1, hw // 2048))    # ...but keep tiles >= ~2048 lanes

    if hw % 128 == 0:
        start = max(min_tiles, _cdiv(hw, cap))
        for t in range(start, min(hw // 128, start + 4096) + 1):
            if hw % t == 0 and (hw // t) % 128 == 0:
                return hw // t, t, hw                 # exact cover, no padding
    if min_tiles <= 1 and hw * per_px_bytes <= budget_bytes:
        return hw, 1, hw                              # single full-extent tile, no padding
    # Rare fallback: pad the pixel axis so a 128-multiple tile covers it.
    # TODO(synk): replace with an in-kernel masked tail store to drop this extra HBM pass.
    tile = min(cap, max(128, _round_up(_cdiv(hw, min_tiles), 128)))
    num_tiles = _cdiv(hw, tile)
    return tile, num_tiles, num_tiles * tile


def _pick_subchunk(tile_hw, max_sub=2048):
    """Largest lane sub-chunk (<= max_sub) that evenly covers the pixel tile."""
    if tile_hw <= max_sub:
        return tile_hw, 1
    for sub in (2048, 1024, 512, 256, 128):
        if tile_hw % sub == 0:
            return sub, tile_hw // sub
    return tile_hw, 1   # ragged full-extent tile: single shot


def _make_kernel(sub, n_sub, unroll):
    def kernel(x_ref, w1_ref, b1_ref, w2_ref, b2_ref, o_ref):
        # x_ref:  (C_in, T)  pixels on lanes       o_ref: (C_out, T)
        # w1_ref: (C_hid, C_in), w2_ref: (C_out, C_hid)   in activation dtype
        # b1_ref: (C_hid, 1) f32, b2_ref: (C_out, 1) f32  (broadcast over lanes)
        w1 = w1_ref[...]
        b1 = b1_ref[...]
        w2 = w2_ref[...]
        b2 = b2_ref[...]

        def fused(x):
            # K = C_in is tiny, so MXU utilization is low, but the kernel is HBM-bound;
            # weights are loop-invariant vregs so they are not re-staged per sub-chunk.
            h = jnp.dot(w1, x, preferred_element_type=jnp.float32) + b1
            h = jnp.maximum(h, 0.0).astype(w2.dtype)              # ReLU, keep MXU dtype
            y = jnp.dot(w2, h, preferred_element_type=jnp.float32) + b2
            return y.astype(o_ref.dtype)

        if n_sub == 1:
            o_ref[...] = fused(x_ref[...])
        else:
            # Stream the tile in lane sub-chunks so h/y live in vregs, never in VMEM.
            def body(i, carry):
                start = pl.multiple_of(i * sub, sub)
                o_ref[:, pl.ds(start, sub)] = fused(x_ref[:, pl.ds(start, sub)])
                return carry

            lax.fori_loop(0, n_sub, body, 0, unroll=unroll)

    return kernel


def update_rule_net(x_nchw, w1, b1, w2, b2, *, tile_hw=None):
    """Fused 1x1conv -> ReLU -> 1x1conv, operating directly on NCHW.

    x_nchw: (N, C_in, H, W)
    w1:     (C_hid, C_in)   (PyTorch conv weight (out, in, 1, 1) squeezed)
    b1:     (C_hid,)
    w2:     (C_out, C_hid)
    b2:     (C_out,)
    returns (N, C_out, H, W) in x_nchw.dtype
    """
    N, C_in, H, W = x_nchw.shape
    C_hid = w1.shape[0]
    C_out = w2.shape[0]
    HW = H * W

    act_dtype = x_nchw.dtype
    itemsize = jnp.dtype(act_dtype).itemsize
    # Real per-pixel VMEM footprint: double-buffered input + output blocks,
    # channel dims padded to 8 sublanes.
    per_px = 2 * _pad8(C_in) * itemsize + 2 * _pad8(C_out) * itemsize

    budget, vmem_limit = _vmem_budget()

    if tile_hw is None:
        tile_hw, num_tiles, hw_pad = _pick_tiling(HW, N, per_px, budget)
    else:
        num_tiles = _cdiv(HW, tile_hw)
        hw_pad = num_tiles * tile_hw

    # Pure view reshape NCHW -> (N, C_in, H*W); no transpose, no extra HBM pass.
    x = x_nchw.reshape(N, C_in, HW)
    if hw_pad != HW:
        # Fallback only: requested tile does not evenly cover H*W.
        x = jnp.pad(x, ((0, 0), (0, 0), (0, hw_pad - HW)))

    # Weights in the activation dtype (native bf16 MXU path when x is bf16);
    # biases stay f32 to match the f32 accumulation.
    w1_c = w1.astype(act_dtype)
    w2_c = w2.astype(act_dtype)
    b1_c = b1.reshape(C_hid, 1).astype(jnp.float32)
    b2_c = b2.reshape(C_out, 1).astype(jnp.float32)

    sub, n_sub = _pick_subchunk(tile_hw)
    kernel = _make_kernel(sub, n_sub, unroll=(n_sub <= 8))

    flops = int(2 * N * HW * (C_in * C_hid + C_hid * C_out))
    bytes_accessed = int(
        N * C_in * HW * itemsize            # read x
        + N * C_out * HW * itemsize         # write y
        + (w1_c.size + w2_c.size) * itemsize
        + (b1_c.size + b2_c.size) * 4)

    out = pl.pallas_call(
        kernel,
        out_shape=jax.ShapeDtypeStruct((N, C_out, hw_pad), act_dtype),
        grid_spec=pltpu.PrefetchScalarGridSpec(
            num_scalar_prefetch=0,
            grid=(N, num_tiles),
            in_specs=[
                # Batch dim squeezed; pixel tile (lane axis) is a multiple of 128
                # or full extent, so loads/stores stay lane-dense (unmasked vst).
                pl.BlockSpec((None, C_in, tile_hw), lambda n, t: (n, 0, t)),
                pl.BlockSpec((C_hid, C_in), lambda n, t: (0, 0)),
                pl.BlockSpec((C_hid, 1), lambda n, t: (0, 0)),
                pl.BlockSpec((C_out, C_hid), lambda n, t: (0, 0)),
                pl.BlockSpec((C_out, 1), lambda n, t: (0, 0)),
            ],
            out_specs=pl.BlockSpec((None, C_out, tile_hw), lambda n, t: (n, 0, t)),
        ),
        compiler_params=pltpu.CompilerParams(
            dimension_semantics=("parallel", "parallel"),
            vmem_limit_bytes=vmem_limit),
        cost_estimate=pl.CostEstimate(
            flops=flops, transcendentals=0, bytes_accessed=bytes_accessed),
    )(x, w1_c, b1_c, w2_c, b2_c)

    if hw_pad != HW:
        out = out[:, :, :HW]
    return out.reshape(N, C_out, H, W)


def init_params(key, in_channels, hidden_channels, out_channels,
                output_zero_weights=True):
    """Parameter init mirroring the module's __init__ shapes.

    conv1: Conv2d(in_channels, hidden_channels, kernel_size=1)
    conv2: Conv2d(hidden_channels, out_channels, kernel_size=1),
           zero-initialized weights & bias when output_zero_weights=True.
    """
    k1, k2, k3 = jax.random.split(key, 3)
    bound1 = 1.0 / jnp.sqrt(in_channels)
    w1 = jax.random.uniform(k1, (hidden_channels, in_channels),
                            minval=-bound1, maxval=bound1, dtype=jnp.float32)
    b1 = jax.random.uniform(k2, (hidden_channels,),
                            minval=-bound1, maxval=bound1, dtype=jnp.float32)
    if output_zero_weights:
        w2 = jnp.zeros((out_channels, hidden_channels), jnp.float32)
        b2 = jnp.zeros((out_channels,), jnp.float32)
    else:
        bound2 = 1.0 / jnp.sqrt(hidden_channels)
        w2 = jax.random.uniform(k3, (out_channels, hidden_channels),
                                minval=-bound2, maxval=bound2, dtype=jnp.float32)
        b2 = jnp.zeros((out_channels,), jnp.float32)
    return w1, b1, w2, b2


def _reference(x_nchw, w1, b1, w2, b2):
    # Pure-JAX reference of the fused 1x1conv -> relu -> 1x1conv.
    h = jnp.einsum('nchw,oc->nohw', x_nchw, w1) + b1[None, :, None, None]
    h = jnp.maximum(h, 0.0)
    y = jnp.einsum('nchw,oc->nohw', h, w2) + b2[None, :, None, None]
    return y


if __name__ == "__main__":
    key = jax.random.PRNGKey(0)
    kx, kp = jax.random.split(key)

    N, C_in, H, W = 2, 4, 16, 16
    C_hid, C_out = 32, 4

    x = jax.random.normal(kx, (N, C_in, H, W), dtype=jnp.float32)
    # Non-zero conv2 weights so the numerical check is meaningful.
    w1, b1, w2, b2 = init_params(kp, C_in, C_hid, C_out, output_zero_weights=False)
    ref = _reference(x, w1, b1, w2, b2)

    # Auto-tiled path (exact-cover tile, no padding).
    out = jax.block_until_ready(update_rule_net(x, w1, b1, w2, b2))
    assert out.shape == (N, C_out, H, W)
    assert jnp.allclose(out, ref, atol=1e-5, rtol=1e-5)

    # Forced multi-tile grid over the pixel axis (H*W = 256, tile = 128, no pad).
    out_t = jax.block_until_ready(update_rule_net(x, w1, b1, w2, b2, tile_hw=128))
    assert jnp.allclose(out_t, ref, atol=1e-5, rtol=1e-5)

    # Ragged pixel axis (H*W = 300): auto path uses one full-extent tile (no pad);
    # forced tile_hw=128 exercises the padded-tail fallback.
    x2 = jax.random.normal(kx, (N, C_in, 15, 20), dtype=jnp.float32)
    ref2 = _reference(x2, w1, b1, w2, b2)
    out2 = jax.block_until_ready(update_rule_net(x2, w1, b1, w2, b2))
    assert jnp.allclose(out2, ref2, atol=1e-5, rtol=1e-5)
    out2p = jax.block_until_ready(update_rule_net(x2, w1, b1, w2, b2, tile_hw=128))
    assert jnp.allclose(out2p, ref2, atol=1e-5, rtol=1e-5)

    # bf16 activations: native bf16 MXU path, f32 accumulation, bf16 output.
    xb = x.astype(jnp.bfloat16)
    outb = jax.block_until_ready(update_rule_net(xb, w1, b1, w2, b2))
    assert outb.dtype == jnp.bfloat16
    assert jnp.allclose(outb.astype(jnp.float32), ref, atol=1e-1, rtol=1e-1)

    # Default module behaviour: zero-initialized conv2 -> all-zero output.
    w1z, b1z, w2z, b2z = init_params(kp, C_in, C_hid, C_out, output_zero_weights=True)
    out_zero = jax.block_until_ready(update_rule_net(x, w1z, b1z, w2z, b2z))
    assert jnp.allclose(out_zero, 0.0)

    print("KERNEL_OK")
</pallas_src>

<mosaic_0001>
module attributes {stable_mosaic.version = 11 : i64} {
  func.func @kernel(%arg0: i32, %arg1: i32, %arg2: memref<1x4x256xf32, #tpu.memory_space<vmem>>, %arg3: memref<32x4xf32, #tpu.memory_space<vmem>>, %arg4: memref<32x1xf32, #tpu.memory_space<vmem>>, %arg5: memref<4x32xf32, #tpu.memory_space<vmem>>, %arg6: memref<4x1xf32, #tpu.memory_space<vmem>>, %arg7: memref<1x4x256xf32, #tpu.memory_space<vmem>>) attributes {dimension_semantics = [#tpu.dimension_semantics<parallel>, #tpu.dimension_semantics<parallel>], iteration_bounds = array<i64: 2, 1>, scalar_prefetch = 0 : i64, scratch_operands = 0 : i64, tpu.core_type = #tpu.core_type<tc>, window_params = [{transform_indices = @transform_0, window_bounds = array<i64: 1, 4, 256>}, {pipeline_mode = #tpu.pipeline_mode<synchronous>, transform_indices = @transform_1, window_bounds = array<i64: 32, 4>}, {pipeline_mode = #tpu.pipeline_mode<synchronous>, transform_indices = @transform_2, window_bounds = array<i64: 32, 1>}, {pipeline_mode = #tpu.pipeline_mode<synchronous>, transform_indices = @transform_3, window_bounds = array<i64: 4, 32>}, {pipeline_mode = #tpu.pipeline_mode<synchronous>, transform_indices = @transform_4, window_bounds = array<i64: 4, 1>}, {transform_indices = @transform_5, window_bounds = array<i64: 1, 4, 256>}]} {
    %c0 = arith.constant 0 : index
    %c0_0 = arith.constant 0 : index
    %0 = vector.load %arg3[%c0, %c0_0] : memref<32x4xf32, #tpu.memory_space<vmem>>, vector<32x4xf32>
    %c0_1 = arith.constant 0 : index
    %c0_2 = arith.constant 0 : index
    %1 = vector.load %arg4[%c0_1, %c0_2] : memref<32x1xf32, #tpu.memory_space<vmem>>, vector<32x1xf32>
    %c0_3 = arith.constant 0 : index
    %c0_4 = arith.constant 0 : index
    %2 = vector.load %arg5[%c0_3, %c0_4] : memref<4x32xf32, #tpu.memory_space<vmem>>, vector<4x32xf32>
    %c0_5 = arith.constant 0 : index
    %c0_6 = arith.constant 0 : index
    %3 = vector.load %arg6[%c0_5, %c0_6] : memref<4x1xf32, #tpu.memory_space<vmem>>, vector<4x1xf32>
    %c0_7 = arith.constant 0 : index
    %c0_8 = arith.constant 0 : index
    %c0_9 = arith.constant 0 : index
    %4 = vector.load %arg2[%c0_7, %c0_8, %c0_9] : memref<1x4x256xf32, #tpu.memory_space<vmem>>, vector<1x4x256xf32>
    %5 = vector.shape_cast %4 : vector<1x4x256xf32> to vector<4x256xf32>
    %cst = arith.constant dense<0.000000e+00> : vector<32x256xf32>
    %6 = tpu.matmul %0, %5, %cst {dimension_numbers = #tpu.dot_dimension_numbers<[1], [0], [0], [1], [0, 0, 1, 1], [], []>} : vector<32x4xf32>, vector<4x256xf32>, vector<32x256xf32> -> vector<32x256xf32>
    %7 = vector.broadcast %1 : vector<32x1xf32> to vector<32x256xf32>
    %8 = arith.addf %6, %7 : vector<32x256xf32>
    %cst_10 = arith.constant 0.000000e+00 : f32
    %9 = vector.broadcast %cst_10 : f32 to vector<32x256xf32>
    %10 = arith.maximumf %8, %9 : vector<32x256xf32>
    %cst_11 = arith.constant dense<0.000000e+00> : vector<4x256xf32>
    %11 = tpu.matmul %2, %10, %cst_11 {dimension_numbers = #tpu.dot_dimension_numbers<[1], [0], [0], [1], [0, 0, 1, 1], [], []>} : vector<4x32xf32>, vector<32x256xf32>, vector<4x256xf32> -> vector<4x256xf32>
    %12 = vector.broadcast %3 : vector<4x1xf32> to vector<4x256xf32>
    %13 = arith.addf %11, %12 : vector<4x256xf32>
    %c0_12 = arith.constant 0 : index
    %c0_13 = arith.constant 0 : index
    %c0_14 = arith.constant 0 : index
    %14 = vector.load %arg7[%c0_12, %c0_13, %c0_14] : memref<1x4x256xf32, #tpu.memory_space<vmem>>, vector<1x4x256xf32>
    %15 = vector.shape_cast %14 : vector<1x4x256xf32> to vector<4x256xf32>
    %16 = vector.shape_cast %13 : vector<4x256xf32> to vector<1x4x256xf32>
    tpu.vector_store %arg7[%c0_12, %c0_13, %c0_14], %16 {strides = array<i32>} : memref<1x4x256xf32, #tpu.memory_space<vmem>>, vector<1x4x256xf32>,
    return
  }
  func.func @transform_0(%arg0: i32, %arg1: i32) -> (i32, i32, i32) {
    %c0_i32 = arith.constant 0 : i32
    %c0_i32_0 = arith.constant 0 : i32
    return %arg0, %c0_i32, %arg1 : i32, i32, i32
  }
  func.func @transform_1(%arg0: i32, %arg1: i32) -> (i32, i32) {
    %c0_i32 = arith.constant 0 : i32
    %c0_i32_0 = arith.constant 0 : i32
    %c0_i32_1 = arith.constant 0 : i32
    return %c0_i32, %c0_i32_0 : i32, i32
  }
  func.func @transform_2(%arg0: i32, %arg1: i32) -> (i32, i32) {
    %c0_i32 = arith.constant 0 : i32
    %c0_i32_0 = arith.constant 0 : i32
    %c0_i32_1 = arith.constant 0 : i32
    return %c0_i32, %c0_i32_0 : i32, i32
  }
  func.func @transform_3(%arg0: i32, %arg1: i32) -> (i32, i32) {
    %c0_i32 = arith.constant 0 : i32
    %c0_i32_0 = arith.constant 0 : i32
    %c0_i32_1 = arith.constant 0 : i32
    return %c0_i32, %c0_i32_0 : i32, i32
  }
  func.func @transform_4(%arg0: i32, %arg1: i32) -> (i32, i32) {
    %c0_i32 = arith.constant 0 : i32
    %c0_i32_0 = arith.constant 0 : i32
    %c0_i32_1 = arith.constant 0 : i32
    return %c0_i32, %c0_i32_0 : i32, i32
  }
  func.func @transform_5(%arg0: i32, %arg1: i32) -> (i32, i32, i32) {
    %c0_i32 = arith.constant 0 : i32
    %c0_i32_0 = arith.constant 0 : i32
    return %arg0, %c0_i32, %arg1 : i32, i32, i32
  }
}

</mosaic_0001>

<bundles_post_ra>
// kernel: tpu_custom_call.1
= control target key start
LH: loop header
LB: loop body
LE: loop exit
PB: predicated region body
PF: predicated region fallthrough
CT: control target
= control target key end

     0   :  { %10 = vsyncpa [#allocation3], 0  ;;  %s902_s0 = inlined_call_operand.vmem [shape: f32[2,4,256], index: 0, kind: input, shape index: {}]   ;;  %s903_s1 = inlined_call_operand.vmem [shape: f32[32,4], index: 1, kind: input, shape index: {}]   ;;  %s904_s2 = inlined_call_operand.vmem [shape: f32[32,1], index: 2, kind: input, shape index: {}]   ;;  %s905_s3 = inlined_call_operand.vmem [shape: f32[4,32], index: 3, kind: input, shape index: {}]   ;;  %s906_s4 = inlined_call_operand.vmem [shape: f32[4,1], index: 4, kind: input, shape index: {}]   ;;  %s907_s5 = inlined_call_operand.hbm [shape: f32[2,4,256], index: 5, kind: output, shape index: {}]  }
   0x1   :  { %12 = vsyncpa [#allocation3 + $0x1], 0  ;;  %s773_s18 = smov 0   ;;  %s775_s19 = smov 0  }
   0x2   :  { %s777_s20 = smov 0   ;;  %s779_s21 = smov 0  }
   0x3   :  { %s781_s22 = smov 0   ;;  %s783_s23 = smov 0  }
   0x4 LB: > { %s580_s24 = sadd.s32 4294967295, %s738_s23   ;;  %s581_s25 = sadd.s32 4294967294, %s738_s23   ;;  %s738_s23 = sphi %s783_s23, %s18_s23   ;;  %s734_s22 = sphi %s781_s22, %s914_s22   ;;  %s730_s21 = sphi %s779_s21, %s913_s21   ;;  %s726_s20 = sphi %s777_s20, %s912_s20   ;;  %s722_s19 = sphi %s775_s19, %s911_s19   ;;  %s718_s18 = sphi %s773_s18, %s910_s18  }
   0x5   : > { %s30_s26 = sadd.s32 1, %s734_s22  ;;  %s151_s27 = sadd.s32 1, %s726_s20 }
   0x6   : > { %p32_p0 = scmp.ge.s32.totalorder %s30_s26, 2  ;;  %p161_p1 = scmp.ne.s32.totalorder %s726_s20, %s722_s19 }
   0x7   : > { %p162_p2 = scmp.eq.s32.totalorder %s580_s24, 1  ;;  %p167_p3 = scmp.ne.s32.totalorder %s722_s19, %s718_s18 }
   0x8   : > { %s916_s26 = smov (%p32_p0, %s30_s26), 0  ;;  %p168_p5 = scmp.eq.s32.totalorder %s581_s25, 1 }
   0x9   : > { %p813_p4 = por %p162_p2, %p161_p1  ;;  %s146_s29 = ssub.s32 %s734_s22, %s916_s26 }
   0xa   : > { %p584_p6 = scmp.ge.s32.totalorder %s738_s23, 1  ;;  %p149_p7 = scmp.eq.s32.totalorder %s146_s29, 0 }
   0xb   : > { %p820_p8 = por %p168_p5, %p167_p3  ;;  %p211_p9 = scmp.lt.s32.totalorder %s738_s23, 3 }
   0xc   : > { %s826_s6 = scalar_select %p149_p7, %s726_s20, %s151_s27  }
   0xd   : > { %p212_p10 = pnand %p584_p6, %p211_p9 }
   0xe   : > { %p244_p11 = scmp.lt.s32.totalorder (!%p212_p10), %s730_s21, 1  ;;  %s240_s17 = sand.u32 (!%p212_p10), 1, %s722_s19  }
   0xf   : > { %215 = sbr.rel (%p212_p10) target bundleno = 461 (0x1cd), region = 40  ;;  %s585_s24 = sshll.u32 (!%p212_p10), %s240_s17, 3 }
  0x10   : > { %s242_s27 = scalar_lea.vmem (!%p212_p10), [#allocation2], %s585_s24  ;;  %s488_s10 = scalar_lea.sflag (!%p212_p10), [#allocation3], %s240_s17 }
  0x11   : > { %s504_s29 = sshll.u32 (!%p212_p10), %s242_s27, 4  ;;  %s505_s29 = int_to_ptr.vmem [resolvable:$true] %s504_s29 }
  0x12   : > { %s662_s11 = scalar_lea.vmem (!%p212_p10), %s505_s29, 128 }
  0x13   : > { %p663_p12 = scmp.ne.s32.totalorder (!%p212_p10), %s505_s29, %s662_s11 }
  0x14   : > { %v740_v0 = vmov 0.0   ;;  %v259_v1 = vld [vmem:[%s904_s2 + $0x8] sm:$0xff]  ;;  %s245_s9 = scalar_select %p244_p11, %s730_s21, 1  ;;  %v741_v2 = vmov 0   ;;  %v261_v3 = vld [vmem:[%s904_s2 + $0x18] sm:$0xff]  ;;  %v258_v4 = vld [vmem:[%s904_s2] sm:$0xff] }
  0x15   : > { %369 = vmatprep.mubr.f32.mxu0 %v740_v0  ;;  %475 = vmatprep.mubr.f32.mxu1 %v740_v0  ;;  %v260_v5 = vld [vmem:[%s904_s2 + $0x10] sm:$0xff]  ;;  %vm300_vm0 = vcmask 1043456   ;;  %v254_v8 = vld [vmem:[%s903_s1] sm:$0xff]  ;;  %vm287_vm1 = vcmask 31744   ;;  %v255_v10 = vld [vmem:[%s903_s1 + $0x8] sm:$0xff]  ;;  %vm407_vm2 = vcmask 261120   ;;  %p664_p13 = pnand %p663_p12, %p813_p4 }
  0x16   : > { %660 = vset.pattern.permute.xlu1 %v741_v2  ;;  %659 = vset.pattern.permute.xlu0 %v741_v2  ;;  %s600_s12 = sshll.u32 %s245_s9, 3  ;;  %v263_v9 = vld [vmem:[%s906_s4] sm:$0xf]  ;;  %v256_v11 = vld [vmem:[%s903_s1 + $0x10] sm:$0xff]  ;;  %v257_v12 = vld [vmem:[%s903_s1 + $0x18] sm:$0xff] }
  0x17   : > { %272 = vperm.xlu1 %660, %v259_v1   ;;  %282 = vperm.xlu0 %659, %v261_v3   ;;  %s251_s25 = scalar_lea.vmem %s902_s0, %s600_s12  ;;  %v262_v41 = vld [vmem:[%s905_s3] sm:$0xf]  ;;  %p665_p0 = pneg %p664_p13 }
  0x18   : > { %v264_v6 = vld [vmem:[%s251_s25] sm:$0xff]  ;;  %s601_s25 = sshll.u32 %s730_s21, 7  ;;  %s742_s12 = smov [#allocation2]  }
  0x19   : > { %v286_v7 = vcombine.high %v264_v6, %v264_v6  ;;  %s502_s9 = scalar_lea.hbm %s907_s5, %s601_s25  ;;  %s666_s13 = sshll.u32 %s742_s12, 4  ;;  %s667_s13 = int_to_ptr.vmem [resolvable:$false] %s666_s13 }
  0x1a   : > { %s668_s21 = scalar_lea.vmem %s667_s13, 256  ;;  %p669_p1 = scmp.lt.s32.totalorder %s505_s29, %s667_s13 }
  0x1b   : > { %267 = vperm.xlu1 %660, %v258_v4   ;;  %277 = vperm.xlu0 %659, %v260_v5   ;;  %p670_p2 = scmp.lt.s32.totalorder %s668_s21, %s662_s11 }
  0x1c   : > { %588 = vmatprep.subr.msk.mxu0 %vm300_vm0, %v286_v7 }
  0x1d   : > { %589 = vmatpush1.msk.msra.mxu0 %vm300_vm0, %v264_v6  ;;  %p671_p3 = por %p670_p2, %p669_p1 }
  0x1e   : > { %590 = vmatmul.mubr.msk.f32.vlgmr.msra.gmra.mxu0 %vm287_vm1, %v254_v8 }
  0x1f   : > { %404 = vperm.xlu0 %659, %v263_v9   ;;  %375 = vmatprep.mubr.f32.mxu0 %v740_v0  ;;  %p672_p5 = pnand %p671_p3, %p665_p0 }
  0x22   : > { %591 = vmatmul.mubr.msk.f32.gmra.mxu0 %vm287_vm1, %v255_v10 }
  0x23   : > { %381 = vmatprep.mubr.f32.mxu0 %v740_v0 }
  0x26   : > { %592 = vmatmul.mubr.msk.f32.gmra.mxu0 %vm287_vm1, %v256_v11 }
  0x27   : > { %387 = vmatprep.mubr.f32.mxu0 %v740_v0 }
  0x2a   : > { %593 = vmatmul.mubr.msk.f32.gmra.mxu0 %vm287_vm1, %v257_v12 }
  0x92   : > { %v283_v17 = vpop.permute.xlu0 %282  ;;  %v273_v20 = vpop.permute.xlu1 %272 }
  0x96   : > { %v278_v22 = vpop.permute.xlu0 %277  ;;  %v268_v28 = vpop.permute.xlu1 %267 }
  0x9a   : > { %v405_v43 = vpop.permute.xlu0 %404 }
  0xde   : > { %v371_v13 = vpop.f32.mrf.mxu0 }
  0xdf   : > { %v372_v35 = vadd.f32 %v371_v13, %v268_v28 }
  0xe0   : > { %v373_v14 = vpop.f32.mrf.mxu0 }
  0xe1   : > { %v374_v33 = vadd.f32 %v373_v14, %v268_v28  ;;  %v394_v40 = vmax.f32 %v372_v35, 0.0 }
  0xe2   : > { %v377_v15 = vpop.f32.mrf.mxu0 }
  0xe3   : > { %v378_v31 = vadd.f32 %v377_v15, %v273_v20  ;;  %v395_v39 = vmax.f32 %v374_v33, 0.0 }
  0xe4   : > { %v379_v16 = vpop.f32.mrf.mxu0 }
  0xe5   : > { %v380_v29 = vadd.f32 %v379_v16, %v273_v20  ;;  %v396_v38 = vmax.f32 %v378_v31, 0.0 }
  0xe6   : > { %v383_v18 = vpop.f32.mrf.mxu0 }
  0xe7   : > { %v384_v27 = vadd.f32 %v383_v18, %v278_v22  ;;  %v397_v37 = vmax.f32 %v380_v29, 0.0 }
  0xe8   : > { %v385_v19 = vpop.f32.mrf.mxu0 }
  0xe9   : > { %v386_v25 = vadd.f32 %v385_v19, %v278_v22  ;;  %v398_v36 = vmax.f32 %v384_v27, 0.0 }
  0xea   : > { %v389_v21 = vpop.f32.mrf.mxu0 }
  0xeb   : > { %v390_v23 = vadd.f32 %v389_v21, %v283_v17  ;;  %v399_v34 = vmax.f32 %v386_v25, 0.0 }
  0xec   : > { %v391_v24 = vpop.f32.mrf.mxu0 }
  0xed   : > { %v392_v26 = vadd.f32 %v391_v24, %v283_v17  ;;  %v400_v32 = vmax.f32 %v390_v23, 0.0 }
  0xef   : > { %v401_v30 = vmax.f32 %v392_v26, 0.0 }
  0xf1   : > { %435 = vmatprep.subr.mxu1 %v401_v30 }
  0xf2   : > { %436 = vmatpush1.msra.mxu1 %v400_v32 }
  0xf3   : > { %437 = vmatprep.subr.mxu1 %v399_v34 }
  0xf4   : > { %438 = vmatpush1.msra.mxu1 %v398_v36 }
  0xf5   : > { %439 = vmatprep.subr.mxu1 %v397_v37 }
  0xf6   : > { %440 = vmatpush1.msra.mxu1 %v396_v38 }
  0xf7   : > { %441 = vmatprep.subr.mxu1 %v395_v39 }
  0xf8   : > { %442 = vmatpush1.msra.mxu1 %v394_v40 }
  0xf9   : > { %594 = vmatmul.mubr.msk.f32.vlgmr.msra.gmra.mxu1 %vm407_vm2, %v262_v41 }
 0x1b9   : > { %v477_v42 = vpop.f32.mrf.mxu1 }
 0x1ba   : > { %v478_v45 = vadd.f32 %v477_v42, %v405_v43 }
 0x1bb   : > { %v479_v44 = vpop.f32.mrf.mxu1 }
 0x1bc   : > { %v480_v46 = vadd.f32 %v479_v44, %v405_v43 }
 0x1be   : > { %v484_v47 = vcombine.low %v478_v45, %v480_v46 }
 0x1c0   : > { %486 = vst [vmem:[%s242_s27] sm:$0xff] %v484_v47 }
 0x1c1   : > { %675 = shalt.err (!%p672_p5)
}
 0x1c2   : > { %s676_s14 = scalar_lea.hbm %s502_s9, 128  ;;  %s680_s17 = scalar_lea.hbm %s907_s5, 256 }
 0x1c3   : > { %p677_p6 = scmp.ne.s32.totalorder %s502_s9, %s676_s14  ;;  %p681_p10 = scmp.lt.s32.totalorder %s502_s9, %s907_s5 }
 0x1c4   : > { %p682_p11 = scmp.lt.s32.totalorder %s680_s17, %s676_s14 }
 0x1c5   : > { %p678_p7 = pnand %p677_p6, %p813_p4 }
 0x1c6   : > { %p683_p12 = por %p682_p11, %p681_p10 }
 0x1c7   : > { %p679_p9 = pneg %p678_p7 }
 0x1c9   : > { %p684_p13 = pnand %p683_p12, %p679_p9 }
 0x1cb   : > { %687 = shalt.err (!%p684_p13)
}
 0x1cc   : > { %602 = dma.vmem_to_hbm [thread:$0]  (%p813_p4), %s505_s29, 128, %s502_s9, %s488_s10  }
 0x1cd PF: > { %p608_p0 = scmp.ge.s32.totalorder %s738_s23, 2  ;;  %s516_s27 = sand.u32 1, %s718_s18  }
 0x1ce   : > { %s517_s7 = scalar_lea.sflag [#allocation3], %s516_s27 }
 0x1cf   : > { %p605_p1 = pnand %p608_p0, %p820_p8 }
 0x1d1   : > { %p606_p2 = pneg %p605_p1 }
 0x1d3   : > { %713 = dma.done.wait (%p606_p2), %s517_s7, 128  }
 0x1d4   : > { %715 = vsyncadd (%p606_p2), %s517_s7, 4294967168  ;;  %s18_s23 = sadd.s32 1, %s738_s23   ;;  %s910_s18 = smov %s722_s19 }
 0x1d5   : > { %p15_p3 = scmp.ge.s32.totalorder %s18_s23, 4   ;;  %s911_s19 = smov %s726_s20 }
 0x1d6   : > { %s912_s20 = smov %s826_s6  ;;  %s913_s21 = smov %s734_s22 }
 0x1d7   : > { %s914_s22 = smov %s916_s26  ;;  %17 = sbr.rel (!%p15_p3) target bundleno = 4 (0x4), region = 75 }
 0x1dc   :  { %522 = vsyncpa [#allocation3], 1 }
 0x1dd   :  { %524 = vsyncpa [#allocation3 + $0x1], 1 }

</bundles_post_ra>
